<compile_context>
chip_gen: v7x
topology: tpu7x:2x2x1
jax: 0.10.0
libtpu: 0.0.40
codegen_flags: <defaults>
</compile_context>

<pallas_src>
import jax
import jax.numpy as jnp
from jax.experimental import pallas as pl
from jax.experimental.pallas import tpu as pltpu


def _round_up(n, m):
    return ((n + m - 1) // m) * m


# ---------------------------------------------------------------------------
# Fused kernel: all Linear + LeakyReLU layers for one batch tile.
#   refs = (x_ref, w0_ref, b0_ref, w1_ref, b1_ref, ..., out_ref)
# x/W tiles are in the MXU dtype (bf16); bias-add + LeakyReLU run in f32.
# ---------------------------------------------------------------------------
def _mapping_kernel(*refs):
    x_ref, out_ref = refs[0], refs[-1]
    wb = refs[1:-1]
    n_layers = len(wb) // 2

    h = x_ref[...]                                     # (TB, K0), MXU dtype
    for l in range(n_layers):                          # static unroll
        w = wb[2 * l][...]                             # (K, N_pad), MXU dtype
        b = wb[2 * l + 1][...]                         # (1, N_pad), f32
        acc = jnp.dot(h, w, preferred_element_type=jnp.float32) + b
        acc = jnp.where(acc >= 0.0, acc, 0.2 * acc)    # LeakyReLU(0.2), f32 VPU
        if l + 1 < n_layers:
            h = acc.astype(w.dtype)                    # next MXU pass in bf16
        else:
            out_ref[...] = acc.astype(out_ref.dtype)   # lane-dense full-width store


# ---------------------------------------------------------------------------
# Wrapper. weights[l] is stored as (in_dim, out_dim), i.e. the transpose of
# torch.nn.Linear.weight; biases[l] is (out_dim,).
# ---------------------------------------------------------------------------
def mapping_network_forward(x, weights, biases, *, block_b=None,
                            mxu_dtype=jnp.bfloat16, lane_align=128):
    B, latent_dim = x.shape
    hidden_dim = weights[-1].shape[1]

    # ---- Batch tiling -----------------------------------------------------
    # Small batch -> one block (block dims equal to the full array dim are
    # always legal).  Large batch -> 256/512-row tiles; ragged last block is
    # handled by Pallas, padded rows only produce output rows never read back.
    if block_b is None:
        if B <= 256:
            block_b = B
        elif B <= 1024:
            block_b = 256          # >= 2 blocks of >= 256 rows (v7x: 2 TCs)
        else:
            block_b = 512
    n_blocks = pl.cdiv(B, block_b)

    # ---- Lane-dense feature padding (zero padding is numerically exact) ----
    x_in = x.astype(mxu_dtype)              # single cast, done in the wrapper
    ws_p, bs_p = [], []
    in_dim = latent_dim                      # first contraction dim stays unpadded
    for w, b in zip(weights, biases):
        k, n = w.shape
        n_pad = _round_up(n, lane_align)
        w32 = jnp.pad(w.astype(jnp.float32), ((0, in_dim - k), (0, n_pad - n)))
        ws_p.append(w32.astype(mxu_dtype))
        bs_p.append(jnp.pad(b.astype(jnp.float32), (0, n_pad - n)).reshape(1, n_pad))
        in_dim = n_pad                       # next layer consumes the padded width
    out_pad = in_dim                         # padded width of the final layer

    # ---- Specs ------------------------------------------------------------
    in_specs = [pl.BlockSpec((block_b, latent_dim), lambda i: (i, 0))]
    operands = [x_in]
    for w_p, b_p in zip(ws_p, bs_p):
        # Constant index_map -> weight/bias blocks stay VMEM-resident across
        # the whole grid (no per-step refetch).
        in_specs.append(pl.BlockSpec(w_p.shape, lambda i: (0, 0)))
        in_specs.append(pl.BlockSpec(b_p.shape, lambda i: (0, 0)))
        operands.append(w_p)
        operands.append(b_p)

    # ---- VMEM budgeting (matters on v7x: 64 MiB physical, 32 MiB scoped) ---
    itemsize = jnp.dtype(mxu_dtype).itemsize
    wb_bytes = (sum(int(w.size) * itemsize for w in ws_p)
                + sum(int(b.size) * 4 for b in bs_p))
    est = (2 * block_b * latent_dim * itemsize   # double-buffered x tile
           + 2 * block_b * out_pad * 4           # double-buffered out tile
           + 2 * wb_bytes                        # resident (double-buffered) weights
           + 3 * block_b * out_pad * 4)          # in-kernel h/acc temporaries
    vmem_limit = None
    if est > 32 * 1024 * 1024:
        vmem_limit = min(int(est * 1.25), 100 * 1024 * 1024)

    out = pl.pallas_call(
        _mapping_kernel,
        out_shape=jax.ShapeDtypeStruct((B, out_pad), jnp.float32),
        grid=(n_blocks,),
        in_specs=in_specs,
        out_specs=pl.BlockSpec((block_b, out_pad), lambda i: (i, 0)),
        compiler_params=pltpu.CompilerParams(
            dimension_semantics=("parallel",),
            vmem_limit_bytes=vmem_limit),
    )(*operands)

    return out[:, :hidden_dim]


if __name__ == "__main__":
    # Small shapes consistent with the module: batch=16, latent_dim=32,
    # hidden_dim=64, num_layers=3.
    B, latent_dim, hidden_dim, num_layers = 16, 32, 64, 3

    key = jax.random.PRNGKey(0)
    keys = jax.random.split(key, 2 * num_layers + 1)
    dims = [latent_dim] + [hidden_dim] * num_layers
    weights, biases = [], []
    for l in range(num_layers):
        weights.append(0.1 * jax.random.normal(
            keys[2 * l], (dims[l], dims[l + 1]), jnp.float32))
        biases.append(0.1 * jax.random.normal(
            keys[2 * l + 1], (dims[l + 1],), jnp.float32))
    x = jax.random.normal(keys[-1], (B, latent_dim), jnp.float32)

    out = mapping_network_forward(x, weights, biases)
    out = jax.block_until_ready(out)

    # Pure-JAX f32 reference of the same forward pass.
    ref = x
    for w, b in zip(weights, biases):
        ref = ref @ w + b
        ref = jnp.where(ref >= 0, ref, 0.2 * ref)

    assert out.shape == (B, hidden_dim), out.shape
    assert bool(jnp.isfinite(out).all())
    # bf16-MXU (f32 accumulate) vs pure-f32 reference: loose absolute tolerance.
    err = float(jnp.max(jnp.abs(out - ref)))
    assert err < 5e-2, err
    print("KERNEL_OK")
</pallas_src>

<mosaic_0001>
module attributes {stable_mosaic.version = 11 : i64} {
  func.func @_mapping_kernel(%arg0: i32, %arg1: memref<16x32xbf16, #tpu.memory_space<vmem>>, %arg2: memref<32x128xbf16, #tpu.memory_space<vmem>>, %arg3: memref<1x128xf32, #tpu.memory_space<vmem>>, %arg4: memref<128x128xbf16, #tpu.memory_space<vmem>>, %arg5: memref<1x128xf32, #tpu.memory_space<vmem>>, %arg6: memref<128x128xbf16, #tpu.memory_space<vmem>>, %arg7: memref<1x128xf32, #tpu.memory_space<vmem>>, %arg8: memref<16x128xf32, #tpu.memory_space<vmem>>) attributes {dimension_semantics = [#tpu.dimension_semantics<parallel>], iteration_bounds = array<i64: 1>, scalar_prefetch = 0 : i64, scratch_operands = 0 : i64, tpu.core_type = #tpu.core_type<tc>, window_params = [{transform_indices = @transform_0, window_bounds = array<i64: 16, 32>}, {pipeline_mode = #tpu.pipeline_mode<synchronous>, transform_indices = @transform_1, window_bounds = array<i64: 32, 128>}, {pipeline_mode = #tpu.pipeline_mode<synchronous>, transform_indices = @transform_2, window_bounds = array<i64: 1, 128>}, {pipeline_mode = #tpu.pipeline_mode<synchronous>, transform_indices = @transform_3, window_bounds = array<i64: 128, 128>}, {pipeline_mode = #tpu.pipeline_mode<synchronous>, transform_indices = @transform_4, window_bounds = array<i64: 1, 128>}, {pipeline_mode = #tpu.pipeline_mode<synchronous>, transform_indices = @transform_5, window_bounds = array<i64: 128, 128>}, {pipeline_mode = #tpu.pipeline_mode<synchronous>, transform_indices = @transform_6, window_bounds = array<i64: 1, 128>}, {transform_indices = @transform_7, window_bounds = array<i64: 16, 128>}]} {
    %c0 = arith.constant 0 : index
    %c0_0 = arith.constant 0 : index
    %0 = vector.load %arg1[%c0, %c0_0] : memref<16x32xbf16, #tpu.memory_space<vmem>>, vector<16x32xbf16>
    %c0_1 = arith.constant 0 : index
    %c0_2 = arith.constant 0 : index
    %1 = vector.load %arg2[%c0_1, %c0_2] : memref<32x128xbf16, #tpu.memory_space<vmem>>, vector<32x128xbf16>
    %c0_3 = arith.constant 0 : index
    %c0_4 = arith.constant 0 : index
    %2 = vector.load %arg3[%c0_3, %c0_4] : memref<1x128xf32, #tpu.memory_space<vmem>>, vector<1x128xf32>
    %cst = arith.constant dense<0.000000e+00> : vector<16x128xf32>
    %3 = tpu.matmul %0, %1, %cst {dimension_numbers = #tpu.dot_dimension_numbers<[1], [0], [0], [1], [0, 0, 1, 1], [], []>} : vector<16x32xbf16>, vector<32x128xbf16>, vector<16x128xf32> -> vector<16x128xf32>
    %4 = vector.broadcast %2 : vector<1x128xf32> to vector<16x128xf32>
    %5 = arith.addf %3, %4 : vector<16x128xf32>
    %cst_5 = arith.constant 0.000000e+00 : f32
    %6 = vector.broadcast %cst_5 : f32 to vector<16x128xf32>
    %7 = arith.cmpf oge, %5, %6 : vector<16x128xf32>
    %cst_6 = arith.constant 2.000000e-01 : f32
    %8 = vector.broadcast %cst_6 : f32 to vector<16x128xf32>
    %9 = arith.mulf %8, %5 : vector<16x128xf32>
    %10 = arith.select %7, %5, %9 : vector<16x128xi1>, vector<16x128xf32>
    %11 = arith.truncf %10 : vector<16x128xf32> to vector<16x128xbf16>
    %c0_7 = arith.constant 0 : index
    %c0_8 = arith.constant 0 : index
    %12 = vector.load %arg4[%c0_7, %c0_8] : memref<128x128xbf16, #tpu.memory_space<vmem>>, vector<128x128xbf16>
    %c0_9 = arith.constant 0 : index
    %c0_10 = arith.constant 0 : index
    %13 = vector.load %arg5[%c0_9, %c0_10] : memref<1x128xf32, #tpu.memory_space<vmem>>, vector<1x128xf32>
    %cst_11 = arith.constant dense<0.000000e+00> : vector<16x128xf32>
    %14 = tpu.matmul %11, %12, %cst_11 {dimension_numbers = #tpu.dot_dimension_numbers<[1], [0], [0], [1], [0, 0, 1, 1], [], []>} : vector<16x128xbf16>, vector<128x128xbf16>, vector<16x128xf32> -> vector<16x128xf32>
    %15 = vector.broadcast %13 : vector<1x128xf32> to vector<16x128xf32>
    %16 = arith.addf %14, %15 : vector<16x128xf32>
    %cst_12 = arith.constant 0.000000e+00 : f32
    %17 = vector.broadcast %cst_12 : f32 to vector<16x128xf32>
    %18 = arith.cmpf oge, %16, %17 : vector<16x128xf32>
    %cst_13 = arith.constant 2.000000e-01 : f32
    %19 = vector.broadcast %cst_13 : f32 to vector<16x128xf32>
    %20 = arith.mulf %19, %16 : vector<16x128xf32>
    %21 = arith.select %18, %16, %20 : vector<16x128xi1>, vector<16x128xf32>
    %22 = arith.truncf %21 : vector<16x128xf32> to vector<16x128xbf16>
    %c0_14 = arith.constant 0 : index
    %c0_15 = arith.constant 0 : index
    %23 = vector.load %arg6[%c0_14, %c0_15] : memref<128x128xbf16, #tpu.memory_space<vmem>>, vector<128x128xbf16>
    %c0_16 = arith.constant 0 : index
    %c0_17 = arith.constant 0 : index
    %24 = vector.load %arg7[%c0_16, %c0_17] : memref<1x128xf32, #tpu.memory_space<vmem>>, vector<1x128xf32>
    %cst_18 = arith.constant dense<0.000000e+00> : vector<16x128xf32>
    %25 = tpu.matmul %22, %23, %cst_18 {dimension_numbers = #tpu.dot_dimension_numbers<[1], [0], [0], [1], [0, 0, 1, 1], [], []>} : vector<16x128xbf16>, vector<128x128xbf16>, vector<16x128xf32> -> vector<16x128xf32>
    %26 = vector.broadcast %24 : vector<1x128xf32> to vector<16x128xf32>
    %27 = arith.addf %25, %26 : vector<16x128xf32>
    %cst_19 = arith.constant 0.000000e+00 : f32
    %28 = vector.broadcast %cst_19 : f32 to vector<16x128xf32>
    %29 = arith.cmpf oge, %27, %28 : vector<16x128xf32>
    %cst_20 = arith.constant 2.000000e-01 : f32
    %30 = vector.broadcast %cst_20 : f32 to vector<16x128xf32>
    %31 = arith.mulf %30, %27 : vector<16x128xf32>
    %32 = arith.select %29, %27, %31 : vector<16x128xi1>, vector<16x128xf32>
    %c0_21 = arith.constant 0 : index
    %c0_22 = arith.constant 0 : index
    %33 = vector.load %arg8[%c0_21, %c0_22] : memref<16x128xf32, #tpu.memory_space<vmem>>, vector<16x128xf32>
    tpu.vector_store %arg8[%c0_21, %c0_22], %32 {strides = array<i32>} : memref<16x128xf32, #tpu.memory_space<vmem>>, vector<16x128xf32>,
    return
  }
  func.func @transform_0(%arg0: i32) -> (i32, i32) {
    %c0_i32 = arith.constant 0 : i32
    %c0_i32_0 = arith.constant 0 : i32
    return %arg0, %c0_i32 : i32, i32
  }
  func.func @transform_1(%arg0: i32) -> (i32, i32) {
    %c0_i32 = arith.constant 0 : i32
    %c0_i32_0 = arith.constant 0 : i32
    %c0_i32_1 = arith.constant 0 : i32
    return %c0_i32, %c0_i32_0 : i32, i32
  }
  func.func @transform_2(%arg0: i32) -> (i32, i32) {
    %c0_i32 = arith.constant 0 : i32
    %c0_i32_0 = arith.constant 0 : i32
    %c0_i32_1 = arith.constant 0 : i32
    return %c0_i32, %c0_i32_0 : i32, i32
  }
  func.func @transform_3(%arg0: i32) -> (i32, i32) {
    %c0_i32 = arith.constant 0 : i32
    %c0_i32_0 = arith.constant 0 : i32
    %c0_i32_1 = arith.constant 0 : i32
    return %c0_i32, %c0_i32_0 : i32, i32
  }
  func.func @transform_4(%arg0: i32) -> (i32, i32) {
    %c0_i32 = arith.constant 0 : i32
    %c0_i32_0 = arith.constant 0 : i32
    %c0_i32_1 = arith.constant 0 : i32
    return %c0_i32, %c0_i32_0 : i32, i32
  }
  func.func @transform_5(%arg0: i32) -> (i32, i32) {
    %c0_i32 = arith.constant 0 : i32
    %c0_i32_0 = arith.constant 0 : i32
    %c0_i32_1 = arith.constant 0 : i32
    return %c0_i32, %c0_i32_0 : i32, i32
  }
  func.func @transform_6(%arg0: i32) -> (i32, i32) {
    %c0_i32 = arith.constant 0 : i32
    %c0_i32_0 = arith.constant 0 : i32
    %c0_i32_1 = arith.constant 0 : i32
    return %c0_i32, %c0_i32_0 : i32, i32
  }
  func.func @transform_7(%arg0: i32) -> (i32, i32) {
    %c0_i32 = arith.constant 0 : i32
    %c0_i32_0 = arith.constant 0 : i32
    return %arg0, %c0_i32 : i32, i32
  }
}

</mosaic_0001>

<bundles_post_ra>
// kernel: tpu_custom_call.1
= control target key start
LH: loop header
LB: loop body
LE: loop exit
PB: predicated region body
PF: predicated region fallthrough
CT: control target
= control target key end

     0   :  { %12 = vsyncpa [#allocation3], 0  ;;  %s833_s0 = inlined_call_operand.hbm [shape: bf16[16,32], index: 0, kind: input, shape index: {}]   ;;  %s834_s1 = inlined_call_operand.hbm [shape: bf16[32,128], index: 1, kind: input, shape index: {}]   ;;  %s835_s2 = inlined_call_operand.vmem [shape: f32[1,128], index: 2, kind: input, shape index: {}]   ;;  %s836_s3 = inlined_call_operand.hbm [shape: bf16[128,128], index: 3, kind: input, shape index: {}]   ;;  %s837_s4 = inlined_call_operand.vmem [shape: f32[1,128], index: 4, kind: input, shape index: {}]   ;;  %s838_s5 = inlined_call_operand.hbm [shape: bf16[128,128], index: 5, kind: input, shape index: {}]   ;;  %s839_s6 = inlined_call_operand.vmem [shape: f32[1,128], index: 6, kind: input, shape index: {}]   ;;  %s840_s7 = inlined_call_operand.hbm [shape: f32[16,128], index: 7, kind: output, shape index: {}]  }
   0x1   :  { %13 = vsyncpa [#allocation6], 0 }
   0x2   :  { %14 = vsyncpa [#allocation9], 0 }
   0x3   :  { %15 = vsyncpa [#allocation4], 0  ;;  %s663_s24 = smov [#allocation5]   ;;  %s664_s26 = smov [#allocation2]  }
   0x4   :  { %s33_s25 = sshll.u32 %s663_s24, 4  ;;  %s21_s27 = sshll.u32 %s664_s26, 4  ;;  %s34_s25 = int_to_ptr.vmem [resolvable:$true] %s33_s25  ;;  %s714_s27 = int_to_ptr.vmem [resolvable:$true] %s21_s27 }
   0x5   :  { %s545_s30 = scalar_lea.hbm %s834_s1, 256 }
   0x6   :  { %p546_p0 = scmp.ne.s32.totalorder %s834_s1, %s545_s30  ;;  %p549_p1 = scmp.lt.u32.totalorder %s545_s30, %s834_s1 }
   0x8   :  { %p551_p2 = pnand %p549_p1, %p546_p0 }
   0xa   :  { %554 = shalt.err (!%p551_p2)
}
   0xb   :  { %s555_s12 = scalar_lea.vmem %s34_s25, 256  ;;  %p560_p4 = scmp.lt.s32.totalorder %s34_s25, %s34_s25 }
   0xc   :  { %p556_p3 = scmp.ne.s32.totalorder %s34_s25, %s555_s12  ;;  %p561_p5 = scmp.lt.s32.totalorder %s555_s12, %s555_s12 }
   0xe   :  { %p562_p6 = por %p561_p5, %p560_p4 }
  0x10   :  { %p563_p7 = pnand %p562_p6, %p556_p3 }
  0x12   :  { %566 = shalt.err (!%p563_p7)
}
  0x13   :  { %s665_s13 = smov 64   ;;  %s666_s14 = smov 4  }
  0x14   :  { %39 = dma.hbm_to_vmem [thread:$0]  %s834_s1, 256, %s34_s25, [#allocation6], %s665_s13, %s665_s13, %s666_s14  }
  0x15   :  { %s567_s19 = scalar_lea.hbm %s833_s0, 128 }
  0x16   :  { %p568_p8 = scmp.ne.s32.totalorder %s833_s0, %s567_s19  ;;  %p571_p9 = scmp.lt.u32.totalorder %s567_s19, %s833_s0 }
  0x18   :  { %p573_p10 = pnand %p571_p9, %p568_p8 }
  0x1a   :  { %576 = shalt.err (!%p573_p10)
}
  0x1b   :  { %s577_s24 = scalar_lea.vmem %s714_s27, 128  ;;  %p582_p12 = scmp.lt.s32.totalorder %s714_s27, %s714_s27 }
  0x1c   :  { %p578_p11 = scmp.ne.s32.totalorder %s714_s27, %s577_s24  ;;  %p583_p13 = scmp.lt.s32.totalorder %s577_s24, %s577_s24 }
  0x1e   :  { %p584_p0 = por %p583_p13, %p582_p12 }
  0x20   :  { %p585_p1 = pnand %p584_p0, %p578_p11 }
  0x22   :  { %588 = shalt.err (!%p585_p1)
}
  0x23   :  { %27 = dma.hbm_to_vmem [thread:$0]  %s833_s0, 128, %s714_s27, [#allocation3], %s665_s13, %s665_s13, %s666_s14  }
  0x24   :  { %s667_s26 = smov [#allocation7]   ;;  %s668_s29 = smov [#allocation8]  }
  0x25   :  { %s47_s28 = sshll.u32 %s667_s26, 4  ;;  %s61_s30 = sshll.u32 %s668_s29, 4  ;;  %s48_s28 = int_to_ptr.vmem [resolvable:$true] %s47_s28  ;;  %s751_s30 = int_to_ptr.vmem [resolvable:$true] %s61_s30 }
  0x26   :  { %s589_s10 = scalar_lea.hbm %s836_s3, 1024 }
  0x27   :  { %p590_p2 = scmp.ne.s32.totalorder %s836_s3, %s589_s10  ;;  %p593_p3 = scmp.lt.u32.totalorder %s589_s10, %s836_s3 }
  0x29   :  { %p595_p4 = pnand %p593_p3, %p590_p2 }
  0x2b   :  { %598 = shalt.err (!%p595_p4)
}
  0x2c   :  { %s599_s0 = scalar_lea.vmem %s48_s28, 1024  ;;  %p604_p6 = scmp.lt.s32.totalorder %s48_s28, %s48_s28 }
  0x2d   :  { %p600_p5 = scmp.ne.s32.totalorder %s48_s28, %s599_s0  ;;  %p605_p7 = scmp.lt.s32.totalorder %s599_s0, %s599_s0 }
  0x2f   :  { %p606_p8 = por %p605_p7, %p604_p6 }
  0x31   :  { %p607_p9 = pnand %p606_p8, %p600_p5 }
  0x33   :  { %610 = shalt.err (!%p607_p9)
}
  0x34   :  { %53 = dma.hbm_to_vmem [thread:$0]  %s836_s3, 1024, %s48_s28, [#allocation6], %s665_s13, %s665_s13, %s666_s14  }
  0x35   :  { %s611_s20 = scalar_lea.hbm %s838_s5, 1024 }
  0x36   :  { %p612_p10 = scmp.ne.s32.totalorder %s838_s5, %s611_s20  ;;  %p615_p11 = scmp.lt.u32.totalorder %s611_s20, %s838_s5 }
  0x38   :  { %p617_p12 = pnand %p615_p11, %p612_p10 }
  0x3a   :  { %620 = shalt.err (!%p617_p12)
}
  0x3b   :  { %s621_s1 = scalar_lea.vmem %s751_s30, 1024  ;;  %p626_p0 = scmp.lt.s32.totalorder %s751_s30, %s751_s30 }
  0x3c   :  { %p622_p13 = scmp.ne.s32.totalorder %s751_s30, %s621_s1  ;;  %p627_p1 = scmp.lt.s32.totalorder %s621_s1, %s621_s1 }
  0x3e   :  { %p628_p2 = por %p627_p1, %p626_p0 }
  0x40   :  { %p629_p3 = pnand %p628_p2, %p622_p13 }
  0x42   :  { %632 = shalt.err (!%p629_p3)
}
  0x43   :  { %67 = dma.hbm_to_vmem [thread:$0]  %s838_s5, 1024, %s751_s30, [#allocation9], %s665_s13, %s665_s13, %s666_s14  }
  0x44   :  { %655 = dma.done.wait [#allocation3], 128  }
  0x45   :  { %656 = vsyncadd [#allocation3], 4294967168 }
  0x46   :  { %657 = dma.done.wait [#allocation6], 1280  }
  0x47   :  { %658 = vsyncadd [#allocation6], 4294966016 }
  0x48   :  { %659 = dma.done.wait [#allocation9], 1024  }
  0x49   :  { %660 = vsyncadd [#allocation9], 4294966272  ;;  %v669_v0 = vmov 0.0   ;;  %vm670_vm0 = vmmov 0   ;;  %v526_v1 = vld [vmem:[#allocation5] sm:$0xff]   ;;  %v527_v2 = vld [vmem:[#allocation5 + $0x8] sm:$0xff]  }
  0x4a   :  { %467 = vmatprep.subr.bf16.mxu0 %v669_v0  ;;  %471 = vmatprep.mubr.msk.bf16.mxu0 %vm670_vm0, %v669_v0  ;;  %v529_v3 = vld [vmem:[#allocation7] sm:$0xff]   ;;  %v528_v4 = vld [vmem:[#allocation2] sm:$0xff]   ;;  %vm113_vm1 = vcmask 261120   ;;  %v531_v6 = vld [vmem:[#allocation7 + $0x10] sm:$0xff]  }
  0x4b   :  { %475 = vmatprep.subr.bf16.mxu1 %v669_v0  ;;  %491 = vmatprep.mubr.msk.bf16.mxu1 %vm670_vm0, %v669_v0  ;;  %v530_v5 = vld [vmem:[#allocation7 + $0x8] sm:$0xff]   ;;  %v532_v7 = vld [vmem:[#allocation7 + $0x18] sm:$0xff]   ;;  %v533_v8 = vld [vmem:[#allocation7 + $0x20] sm:$0xff]  }
  0x4c   :  { %468 = vmatpush3.bf16.msra.mxu0 %v526_v1  ;;  %476 = vmatpush3.bf16.msra.mxu1 %v529_v3  ;;  %v534_v9 = vld [vmem:[#allocation7 + $0x28] sm:$0xff]   ;;  %v535_v10 = vld [vmem:[#allocation7 + $0x30] sm:$0xff]   ;;  %v536_v11 = vld [vmem:[#allocation7 + $0x38] sm:$0xff]  }
  0x4d   :  { %469 = vmatprep.subr.bf16.mxu0 %v669_v0  ;;  %477 = vmatprep.subr.bf16.mxu1 %v669_v0  ;;  %v537_v12 = vld [vmem:[#allocation8] sm:$0xff]   ;;  %v538_v13 = vld [vmem:[#allocation8 + $0x8] sm:$0xff]   ;;  %v539_v14 = vld [vmem:[#allocation8 + $0x10] sm:$0xff]  }
  0x4e   :  { %v540_v15 = vld [vmem:[#allocation8 + $0x18] sm:$0xff]   ;;  %v541_v16 = vld [vmem:[#allocation8 + $0x20] sm:$0xff]   ;;  %v542_v17 = vld [vmem:[#allocation8 + $0x28] sm:$0xff]  }
  0x4f   :  { %v423_v18 = vld [vmem:[%s835_s2] ss:$0 sm:$0xff]  ;;  %v543_v30 = vld [vmem:[#allocation8 + $0x30] sm:$0xff]   ;;  %v544_v31 = vld [vmem:[#allocation8 + $0x38] sm:$0xff]  }
  0x50   :  { %470 = vmatpush3.bf16.msra.mxu0 %v527_v2  ;;  %478 = vmatpush3.bf16.msra.mxu1 %v530_v5  ;;  %v428_v32 = vld [vmem:[%s837_s4] ss:$0 sm:$0xff]  ;;  %s671_s4 = smov [#allocation10]  }
  0x51   :  { %495 = vmatprep.subr.bf16.mxu0 %v669_v0  ;;  %479 = vmatprep.subr.bf16.mxu1 %v669_v0  ;;  %v437_v44 = vld [vmem:[%s839_s6] ss:$0 sm:$0xff]  ;;  %s409_s29 = sshll.u32 %s671_s4, 4  ;;  %s410_s29 = int_to_ptr.vmem [resolvable:$true] %s409_s29 }
  0x52   :  { %s633_s30 = scalar_lea.vmem %s410_s29, 256  ;;  %p638_p5 = scmp.lt.s32.totalorder %s410_s29, %s410_s29 }
  0x53   :  { %472 = vmatmul.mubr.msk.bf16.vlgmr.msra.gmra.mrb[0].mxu0 %vm113_vm1, %v528_v4  ;;  %p634_p4 = scmp.ne.s32.totalorder %s410_s29, %s633_s30  ;;  %p639_p6 = scmp.lt.s32.totalorder %s633_s30, %s633_s30 }
  0x54   :  { %511 = vmatprep.mubr.msk.bf16.mxu0 %vm670_vm0, %v669_v0  ;;  %480 = vmatpush3.bf16.msra.mxu1 %v531_v6 }
  0x55   :  { %481 = vmatprep.subr.bf16.mxu1 %v669_v0  ;;  %496 = vmatpush3.bf16.msra.mxu0 %v537_v12  ;;  %p640_p7 = por %p639_p6, %p638_p5 }
  0x56   :  { %497 = vmatprep.subr.bf16.mxu0 %v669_v0 }
  0x57   :  { %p641_p8 = pnand %p640_p7, %p634_p4 }
  0x58   :  { %482 = vmatpush3.bf16.msra.mxu1 %v532_v7 }
  0x59   :  { %483 = vmatprep.subr.bf16.mxu1 %v669_v0  ;;  %498 = vmatpush3.bf16.msra.mxu0 %v538_v13 }
  0x5a   :  { %499 = vmatprep.subr.bf16.mxu0 %v669_v0 }
  0x5c   :  { %484 = vmatpush3.bf16.msra.mxu1 %v533_v8 }
  0x5d   :  { %485 = vmatprep.subr.bf16.mxu1 %v669_v0  ;;  %500 = vmatpush3.bf16.msra.mxu0 %v539_v14 }
  0x5e   :  { %501 = vmatprep.subr.bf16.mxu0 %v669_v0 }
  0x60   :  { %486 = vmatpush3.bf16.msra.mxu1 %v534_v9 }
  0x61   :  { %487 = vmatprep.subr.bf16.mxu1 %v669_v0  ;;  %502 = vmatpush3.bf16.msra.mxu0 %v540_v15 }
  0x62   :  { %503 = vmatprep.subr.bf16.mxu0 %v669_v0 }
  0x64   :  { %488 = vmatpush3.bf16.msra.mxu1 %v535_v10 }
  0x65   :  { %489 = vmatprep.subr.bf16.mxu1 %v669_v0  ;;  %504 = vmatpush3.bf16.msra.mxu0 %v541_v16 }
  0x66   :  { %505 = vmatprep.subr.bf16.mxu0 %v669_v0 }
  0x68   :  { %490 = vmatpush3.bf16.msra.mxu1 %v536_v11 }
  0x69   :  { %506 = vmatpush3.bf16.msra.mxu0 %v542_v17 }
  0x6a   :  { %507 = vmatprep.subr.bf16.mxu0 %v669_v0 }
  0x6d   :  { %508 = vmatpush3.bf16.msra.mxu0 %v543_v30 }
  0x6e   :  { %509 = vmatprep.subr.bf16.mxu0 %v669_v0 }
  0x71   :  { %510 = vmatpush3.bf16.msra.mxu0 %v544_v31 }
 0x126   :  { %v151_v19 = vpop.f32.mrb[0].mxu0 }
 0x127   :  { %v152_v20 = vadd.f32 %v423_v18, %v151_v19  ;;  %v473_v21 = vpop.f32.mrb[1].mxu0 }
 0x128   :  { %v154_v22 = vpop.f32.mrb[2].mxu0 }
 0x129   :  { %v160_v23 = vmul.f32 0.2, %v152_v20  ;;  %v155_v24 = vadd.f32 %v423_v18, %v154_v22  ;;  %v474_v25 = vpop.f32.mrb[3].mxu0  ;;  %vm158_vm2 = vcmp.ge.f32.partialorder %v152_v20, 0.0 }
 0x12b   :  { %vm159_vm3 = vcmp.ge.f32.partialorder %v155_v24, 0.0  ;;  %v161_v26 = vmul.f32 0.2, %v155_v24  ;;  %v162_v27 = vsel %vm158_vm2, %v152_v20, %v160_v23 }
 0x12d   :  { %v163_v28 = vsel %vm159_vm3, %v155_v24, %v161_v26 }
 0x12e   :  { %v164_v29 = vpack.c.bf16 %v163_v28, %v162_v27 }
 0x130   :  { %492 = vmatmul.mubr.bf16.vlgmr.msra.gmra.mrb[0].mxu1 %v164_v29 }
 0x203   :  { %v270_v33 = vpop.f32.mrb[0].mxu1 }
 0x204   :  { %v271_v34 = vadd.f32 %v428_v32, %v270_v33  ;;  %v493_v35 = vpop.f32.mrb[1].mxu1 }
 0x205   :  { %v273_v36 = vpop.f32.mrb[2].mxu1 }
 0x206   :  { %v279_v37 = vmul.f32 0.2, %v271_v34  ;;  %v274_v38 = vadd.f32 %v428_v32, %v273_v36  ;;  %v494_v39 = vpop.f32.mrb[3].mxu1  ;;  %vm277_vm4 = vcmp.ge.f32.partialorder %v271_v34, 0.0 }
 0x208   :  { %vm278_vm5 = vcmp.ge.f32.partialorder %v274_v38, 0.0  ;;  %v280_v40 = vmul.f32 0.2, %v274_v38  ;;  %v281_v41 = vsel %vm277_vm4, %v271_v34, %v279_v37 }
 0x20a   :  { %v282_v42 = vsel %vm278_vm5, %v274_v38, %v280_v40 }
 0x20b   :  { %v283_v43 = vpack.c.bf16 %v282_v42, %v281_v41 }
 0x20d   :  { %512 = vmatmul.mubr.bf16.vlgmr.msra.gmra.mrb[4].mxu0 %v283_v43 }
 0x2e0   :  { %v389_v45 = vpop.f32.mrb[4].mxu0 }
 0x2e1   :  { %v390_v46 = vadd.f32 %v437_v44, %v389_v45  ;;  %v513_v47 = vpop.f32.mrb[5].mxu0 }
 0x2e2   :  { %v392_v48 = vpop.f32.mrb[6].mxu0 }
 0x2e3   :  { %vm396_vm6 = vcmp.ge.f32.partialorder %v390_v46, 0.0  ;;  %v398_v49 = vmul.f32 0.2, %v390_v46  ;;  %v393_v50 = vadd.f32 %v437_v44, %v392_v48  ;;  %v514_v51 = vpop.f32.mrb[7].mxu0 }
 0x2e5   :  { %v400_v52 = vsel %vm396_vm6, %v390_v46, %v398_v49  ;;  %vm397_vm7 = vcmp.ge.f32.partialorder %v393_v50, 0.0  ;;  %v399_v53 = vmul.f32 0.2, %v393_v50 }
 0x2e6   :  { %402 = vst [vmem:[#allocation10] sm:$0xff] %v400_v52 }
 0x2e7   :  { %v401_v54 = vsel %vm397_vm7, %v393_v50, %v399_v53 }
 0x2e8   :  { %403 = vst [vmem:[#allocation10 + $0x8] sm:$0xff] %v401_v54 }
 0x2e9   :  { %644 = shalt.err (!%p641_p8)
}
 0x2ea   :  { %s645_s9 = scalar_lea.hbm %s840_s7, 256 }
 0x2eb   :  { %p646_p9 = scmp.ne.s32.totalorder %s840_s7, %s645_s9  ;;  %p649_p10 = scmp.lt.u32.totalorder %s645_s9, %s840_s7 }
 0x2ed   :  { %p651_p11 = pnand %p649_p10, %p646_p9 }
 0x2ef   :  { %654 = shalt.err (!%p651_p11)
}
 0x2f0   :  { %s672_s16 = smov 128   ;;  %s673_s0 = smov 8  }
 0x2f1   :  { %415 = dma.vmem_to_hbm [thread:$0]  %s410_s29, 256, %s840_s7, [#allocation4], %s672_s16, %s672_s16, %s673_s0  }
 0x2f2   :  { %661 = dma.done.wait [#allocation4], 256  }
 0x2f3   :  { %662 = vsyncadd [#allocation4], 4294967040 }
 0x2f4   :  { %419 = vsyncpa [#allocation3], 1 }
 0x2f5   :  { %420 = vsyncpa [#allocation6], 1 }
 0x2f6   :  { %421 = vsyncpa [#allocation9], 1 }
 0x2f7   :  { %422 = vsyncpa [#allocation4], 1 }

</bundles_post_ra>
